<compile_context>
chip_gen: v7x
topology: tpu7x:2x2x1
jax: 0.10.0
libtpu: 0.0.40
codegen_flags: <defaults>
</compile_context>

<pallas_src>
import jax
import jax.numpy as jnp
from jax.experimental import pallas as pl
from jax.experimental.pallas import tpu as pltpu


# ----------------------------------------------------------------------------
# Pallas kernel: one (batch, N-tile) per grid step, channel-major blocks.
#   xa = x + res                      (C, TN)
#   h  = relu(W1f @ xa + t1)          (Ci, TN)
#   xl = W2f @ h + t2                 (C, TN)
#   wei = sigmoid(xl + xg)            xg is (C, 1), precomputed outside
#   out = 2*(res + (x - res)*wei)
# ----------------------------------------------------------------------------
def aff_kernel(x_ref, r_ref, xg_ref,
               w1_ref, t1_ref, w2_ref, t2_ref,
               o_ref):
    x = x_ref[0]            # (C, TN)
    res = r_ref[0]          # (C, TN)
    xa = x + res

    # local attention branch (1x1 conv MLP, BN folded into weights)
    h = jnp.dot(w1_ref[...], xa, preferred_element_type=jnp.float32)   # (Ci, TN)
    h = jnp.maximum(h + t1_ref[...], 0.0)
    xl = jnp.dot(w2_ref[...], h, preferred_element_type=jnp.float32) + t2_ref[...]

    # fuse with hoisted global branch (lane-broadcast of (C, 1))
    wei = jax.nn.sigmoid(xl + xg_ref[0])
    o_ref[0] = (2.0 * (res + (x - res) * wei)).astype(o_ref.dtype)


def _pick_tile_n(N, C, itemsize=4, budget_bytes=16 * 1024 * 1024):
    """Largest multiple of 128 dividing N s.t. 3 streams x 2 buffers fit budget."""
    max_tn = max(128, budget_bytes // (6 * C * itemsize))
    max_tn = (max_tn // 128) * 128
    if max_tn >= N:
        return N
    for tn in range(max_tn, 0, -128):
        if N % tn == 0:
            return tn
    return N  # fallback: full-dim block is always legal


def aff_pallas(x_nchw, res_nchw, fp):
    """x, residual: (B, C, H, W) float32 -> (B, C, H, W) float32.

    fp: folded params {lw1 (Ci,C), lt1 (Ci,), lw2 (C,Ci), lt2 (C,),
                       gw1 (Ci,C), gt1 (Ci,), gw2 (C,Ci), gt2 (C,)}.
    """
    B, C, H, W = x_nchw.shape
    N = H * W
    Ci = fp["lw1"].shape[0]

    # channel-major, no transpose: (B, C, N)
    x3 = x_nchw.reshape(B, C, N)
    r3 = res_nchw.reshape(B, C, N)

    # ---- global branch hoisted out of the kernel (tiny: B*C work) ----
    m = jnp.mean(x3 + r3, axis=2)                               # (B, C)
    g = jnp.maximum(m @ fp["gw1"].T + fp["gt1"], 0.0)           # (B, Ci)
    xg = (g @ fp["gw2"].T + fp["gt2"])[:, :, None]              # (B, C, 1)

    tn = _pick_tile_n(N, C)
    grid = (B, N // tn)

    big = pl.BlockSpec((1, C, tn), lambda b, n: (b, 0, n))
    const2d = lambda shape: pl.BlockSpec(shape, lambda b, n: (0, 0))

    out = pl.pallas_call(
        aff_kernel,
        out_shape=jax.ShapeDtypeStruct((B, C, N), jnp.float32),
        grid_spec=pltpu.PrefetchScalarGridSpec(
            num_scalar_prefetch=0,
            grid=grid,
            in_specs=[
                big, big,
                pl.BlockSpec((1, C, 1), lambda b, n: (b, 0, 0)),   # xg
                const2d((Ci, C)), const2d((Ci, 1)),                # W1f, t1
                const2d((C, Ci)), const2d((C, 1)),                 # W2f, t2
            ],
            out_specs=big,
        ),
        compiler_params=pltpu.CompilerParams(
            dimension_semantics=("parallel", "parallel"),
            vmem_limit_bytes=32 * 1024 * 1024,
        ),
    )(x3, r3, xg,
      fp["lw1"], fp["lt1"][:, None],
      fp["lw2"], fp["lt2"][:, None])

    return out.reshape(B, C, H, W)


# ----------------------------------------------------------------------------
# Parameters: raw conv + BN (eval mode), and folding into matmul + shift.
# ----------------------------------------------------------------------------
def make_raw_branch(key, C, Ci):
    ks = jax.random.split(key, 12)
    return dict(
        w1=jax.random.normal(ks[0], (Ci, C), jnp.float32) * 0.1,
        b1=jax.random.normal(ks[1], (Ci,), jnp.float32) * 0.1,
        g1=1.0 + 0.1 * jax.random.normal(ks[2], (Ci,), jnp.float32),
        be1=0.1 * jax.random.normal(ks[3], (Ci,), jnp.float32),
        mu1=0.1 * jax.random.normal(ks[4], (Ci,), jnp.float32),
        var1=0.5 + jax.random.uniform(ks[5], (Ci,), jnp.float32),
        w2=jax.random.normal(ks[6], (C, Ci), jnp.float32) * 0.1,
        b2=jax.random.normal(ks[7], (C,), jnp.float32) * 0.1,
        g2=1.0 + 0.1 * jax.random.normal(ks[8], (C,), jnp.float32),
        be2=0.1 * jax.random.normal(ks[9], (C,), jnp.float32),
        mu2=0.1 * jax.random.normal(ks[10], (C,), jnp.float32),
        var2=0.5 + jax.random.uniform(ks[11], (C,), jnp.float32),
    )


def fold_branch(p, eps=1e-5):
    s1 = p["g1"] / jnp.sqrt(p["var1"] + eps)
    t1 = p["be1"] + (p["b1"] - p["mu1"]) * s1
    s2 = p["g2"] / jnp.sqrt(p["var2"] + eps)
    t2 = p["be2"] + (p["b2"] - p["mu2"]) * s2
    return dict(w1=p["w1"] * s1[:, None], t1=t1,
                w2=p["w2"] * s2[:, None], t2=t2)


# ----------------------------------------------------------------------------
# Pure-JAX reference mirroring the PyTorch module (conv1x1 + eval-mode BN).
# ----------------------------------------------------------------------------
def aff_reference(x, res, raw_local, raw_global, eps=1e-5):
    xa = x + res                                                # (B,C,H,W)

    def conv1x1(inp, w, b):
        return jnp.einsum("bchw,oc->bohw", inp, w) + b[None, :, None, None]

    def bn(inp, g, be, mu, var):
        return ((inp - mu[None, :, None, None])
                / jnp.sqrt(var + eps)[None, :, None, None]
                * g[None, :, None, None] + be[None, :, None, None])

    def branch(inp, p):
        h = bn(conv1x1(inp, p["w1"], p["b1"]), p["g1"], p["be1"], p["mu1"], p["var1"])
        h = jnp.maximum(h, 0.0)
        return bn(conv1x1(h, p["w2"], p["b2"]), p["g2"], p["be2"], p["mu2"], p["var2"])

    xl = branch(xa, raw_local)
    m = jnp.mean(xa, axis=(2, 3), keepdims=True)
    xg = branch(m, raw_global)
    wei = jax.nn.sigmoid(xl + xg)
    return 2.0 * x * wei + 2.0 * res * (1.0 - wei)


if __name__ == "__main__":
    B, C, H, W = 2, 32, 16, 16
    r = 4
    Ci = C // r

    key = jax.random.PRNGKey(0)
    kx, kr, kl, kg = jax.random.split(key, 4)
    x = jax.random.normal(kx, (B, C, H, W), jnp.float32)
    residual = jax.random.normal(kr, (B, C, H, W), jnp.float32)

    raw_l = make_raw_branch(kl, C, Ci)
    raw_g = make_raw_branch(kg, C, Ci)
    fl = fold_branch(raw_l)
    fg = fold_branch(raw_g)
    folded = dict(
        lw1=fl["w1"], lt1=fl["t1"], lw2=fl["w2"], lt2=fl["t2"],
        gw1=fg["w1"], gt1=fg["t1"], gw2=fg["w2"], gt2=fg["t2"],
    )

    out = aff_pallas(x, residual, folded)
    out = jax.block_until_ready(out)

    ref = aff_reference(x, residual, raw_l, raw_g)
    assert out.shape == (B, C, H, W)
    max_err = jnp.max(jnp.abs(out - ref))
    assert jnp.allclose(out, ref, atol=2e-4, rtol=2e-4), f"max err {max_err}"
    print("KERNEL_OK")
</pallas_src>

<mosaic_0001>
module attributes {stable_mosaic.version = 11 : i64} {
  func.func @aff_kernel(%arg0: i32, %arg1: i32, %arg2: memref<1x32x256xf32, #tpu.memory_space<vmem>>, %arg3: memref<1x32x256xf32, #tpu.memory_space<vmem>>, %arg4: memref<1x32x1xf32, #tpu.memory_space<vmem>>, %arg5: memref<8x32xf32, #tpu.memory_space<vmem>>, %arg6: memref<8x1xf32, #tpu.memory_space<vmem>>, %arg7: memref<32x8xf32, #tpu.memory_space<vmem>>, %arg8: memref<32x1xf32, #tpu.memory_space<vmem>>, %arg9: memref<1x32x256xf32, #tpu.memory_space<vmem>>) attributes {dimension_semantics = [#tpu.dimension_semantics<parallel>, #tpu.dimension_semantics<parallel>], iteration_bounds = array<i64: 2, 1>, scalar_prefetch = 0 : i64, scratch_operands = 0 : i64, tpu.core_type = #tpu.core_type<tc>, window_params = [{transform_indices = @transform_0, window_bounds = array<i64: 1, 32, 256>}, {transform_indices = @transform_1, window_bounds = array<i64: 1, 32, 256>}, {transform_indices = @transform_2, window_bounds = array<i64: 1, 32, 1>}, {pipeline_mode = #tpu.pipeline_mode<synchronous>, transform_indices = @transform_3, window_bounds = array<i64: 8, 32>}, {pipeline_mode = #tpu.pipeline_mode<synchronous>, transform_indices = @transform_4, window_bounds = array<i64: 8, 1>}, {pipeline_mode = #tpu.pipeline_mode<synchronous>, transform_indices = @transform_5, window_bounds = array<i64: 32, 8>}, {pipeline_mode = #tpu.pipeline_mode<synchronous>, transform_indices = @transform_6, window_bounds = array<i64: 32, 1>}, {transform_indices = @transform_7, window_bounds = array<i64: 1, 32, 256>}]} {
    %c0 = arith.constant 0 : index
    %c0_0 = arith.constant 0 : index
    %c0_1 = arith.constant 0 : index
    %0 = vector.load %arg2[%c0, %c0_0, %c0_1] : memref<1x32x256xf32, #tpu.memory_space<vmem>>, vector<1x32x256xf32>
    %1 = vector.shape_cast %0 : vector<1x32x256xf32> to vector<32x256xf32>
    %c0_2 = arith.constant 0 : index
    %c0_3 = arith.constant 0 : index
    %c0_4 = arith.constant 0 : index
    %2 = vector.load %arg3[%c0_2, %c0_3, %c0_4] : memref<1x32x256xf32, #tpu.memory_space<vmem>>, vector<1x32x256xf32>
    %3 = vector.shape_cast %2 : vector<1x32x256xf32> to vector<32x256xf32>
    %4 = arith.addf %1, %3 : vector<32x256xf32>
    %c0_5 = arith.constant 0 : index
    %c0_6 = arith.constant 0 : index
    %5 = vector.load %arg5[%c0_5, %c0_6] : memref<8x32xf32, #tpu.memory_space<vmem>>, vector<8x32xf32>
    %cst = arith.constant dense<0.000000e+00> : vector<8x256xf32>
    %6 = tpu.matmul %5, %4, %cst {dimension_numbers = #tpu.dot_dimension_numbers<[1], [0], [0], [1], [0, 0, 1, 1], [], []>} : vector<8x32xf32>, vector<32x256xf32>, vector<8x256xf32> -> vector<8x256xf32>
    %c0_7 = arith.constant 0 : index
    %c0_8 = arith.constant 0 : index
    %7 = vector.load %arg6[%c0_7, %c0_8] : memref<8x1xf32, #tpu.memory_space<vmem>>, vector<8x1xf32>
    %8 = vector.broadcast %7 : vector<8x1xf32> to vector<8x256xf32>
    %9 = arith.addf %6, %8 : vector<8x256xf32>
    %cst_9 = arith.constant 0.000000e+00 : f32
    %10 = vector.broadcast %cst_9 : f32 to vector<8x256xf32>
    %11 = arith.maximumf %9, %10 : vector<8x256xf32>
    %c0_10 = arith.constant 0 : index
    %c0_11 = arith.constant 0 : index
    %12 = vector.load %arg7[%c0_10, %c0_11] : memref<32x8xf32, #tpu.memory_space<vmem>>, vector<32x8xf32>
    %cst_12 = arith.constant dense<0.000000e+00> : vector<32x256xf32>
    %13 = tpu.matmul %12, %11, %cst_12 {dimension_numbers = #tpu.dot_dimension_numbers<[1], [0], [0], [1], [0, 0, 1, 1], [], []>} : vector<32x8xf32>, vector<8x256xf32>, vector<32x256xf32> -> vector<32x256xf32>
    %c0_13 = arith.constant 0 : index
    %c0_14 = arith.constant 0 : index
    %14 = vector.load %arg8[%c0_13, %c0_14] : memref<32x1xf32, #tpu.memory_space<vmem>>, vector<32x1xf32>
    %15 = vector.broadcast %14 : vector<32x1xf32> to vector<32x256xf32>
    %16 = arith.addf %13, %15 : vector<32x256xf32>
    %c0_15 = arith.constant 0 : index
    %c0_16 = arith.constant 0 : index
    %c0_17 = arith.constant 0 : index
    %17 = vector.load %arg4[%c0_15, %c0_16, %c0_17] : memref<1x32x1xf32, #tpu.memory_space<vmem>>, vector<1x32x1xf32>
    %18 = vector.shape_cast %17 : vector<1x32x1xf32> to vector<32x1xf32>
    %19 = vector.broadcast %18 : vector<32x1xf32> to vector<32x256xf32>
    %20 = arith.addf %16, %19 : vector<32x256xf32>
    %21 = arith.negf %20 : vector<32x256xf32>
    %22 = math.exp %21 : vector<32x256xf32>
    %cst_18 = arith.constant 1.000000e+00 : f32
    %23 = vector.broadcast %cst_18 : f32 to vector<32x256xf32>
    %24 = arith.addf %23, %22 : vector<32x256xf32>
    %25 = arith.divf %23, %24 : vector<32x256xf32>
    %26 = arith.subf %1, %3 : vector<32x256xf32>
    %27 = arith.mulf %26, %25 : vector<32x256xf32>
    %28 = arith.addf %3, %27 : vector<32x256xf32>
    %cst_19 = arith.constant 2.000000e+00 : f32
    %29 = vector.broadcast %cst_19 : f32 to vector<32x256xf32>
    %30 = arith.mulf %29, %28 : vector<32x256xf32>
    %c0_20 = arith.constant 0 : index
    %c0_21 = arith.constant 0 : index
    %c0_22 = arith.constant 0 : index
    %31 = vector.load %arg9[%c0_20, %c0_21, %c0_22] : memref<1x32x256xf32, #tpu.memory_space<vmem>>, vector<1x32x256xf32>
    %32 = vector.shape_cast %31 : vector<1x32x256xf32> to vector<32x256xf32>
    %33 = vector.shape_cast %30 : vector<32x256xf32> to vector<1x32x256xf32>
    tpu.vector_store %arg9[%c0_20, %c0_21, %c0_22], %33 {strides = array<i32>} : memref<1x32x256xf32, #tpu.memory_space<vmem>>, vector<1x32x256xf32>,
    return
  }
  func.func @transform_0(%arg0: i32, %arg1: i32) -> (i32, i32, i32) {
    %c0_i32 = arith.constant 0 : i32
    %c0_i32_0 = arith.constant 0 : i32
    return %arg0, %c0_i32, %arg1 : i32, i32, i32
  }
  func.func @transform_1(%arg0: i32, %arg1: i32) -> (i32, i32, i32) {
    %c0_i32 = arith.constant 0 : i32
    %c0_i32_0 = arith.constant 0 : i32
    return %arg0, %c0_i32, %arg1 : i32, i32, i32
  }
  func.func @transform_2(%arg0: i32, %arg1: i32) -> (i32, i32, i32) {
    %c0_i32 = arith.constant 0 : i32
    %c0_i32_0 = arith.constant 0 : i32
    %c0_i32_1 = arith.constant 0 : i32
    return %arg0, %c0_i32, %c0_i32_0 : i32, i32, i32
  }
  func.func @transform_3(%arg0: i32, %arg1: i32) -> (i32, i32) {
    %c0_i32 = arith.constant 0 : i32
    %c0_i32_0 = arith.constant 0 : i32
    %c0_i32_1 = arith.constant 0 : i32
    return %c0_i32, %c0_i32_0 : i32, i32
  }
  func.func @transform_4(%arg0: i32, %arg1: i32) -> (i32, i32) {
    %c0_i32 = arith.constant 0 : i32
    %c0_i32_0 = arith.constant 0 : i32
    %c0_i32_1 = arith.constant 0 : i32
    return %c0_i32, %c0_i32_0 : i32, i32
  }
  func.func @transform_5(%arg0: i32, %arg1: i32) -> (i32, i32) {
    %c0_i32 = arith.constant 0 : i32
    %c0_i32_0 = arith.constant 0 : i32
    %c0_i32_1 = arith.constant 0 : i32
    return %c0_i32, %c0_i32_0 : i32, i32
  }
  func.func @transform_6(%arg0: i32, %arg1: i32) -> (i32, i32) {
    %c0_i32 = arith.constant 0 : i32
    %c0_i32_0 = arith.constant 0 : i32
    %c0_i32_1 = arith.constant 0 : i32
    return %c0_i32, %c0_i32_0 : i32, i32
  }
  func.func @transform_7(%arg0: i32, %arg1: i32) -> (i32, i32, i32) {
    %c0_i32 = arith.constant 0 : i32
    %c0_i32_0 = arith.constant 0 : i32
    return %arg0, %c0_i32, %arg1 : i32, i32, i32
  }
}

</mosaic_0001>

<bundles_post_ra>
// kernel: tpu_custom_call.1
= control target key start
LH: loop header
LB: loop body
LE: loop exit
PB: predicated region body
PF: predicated region fallthrough
CT: control target
= control target key end

     0   :  { %12 = vsyncpa [#allocation3], 0  ;;  %s1491_s0 = inlined_call_operand.vmem [shape: f32[2,32,256], index: 0, kind: input, shape index: {}]   ;;  %s1492_s1 = inlined_call_operand.hbm [shape: f32[2,32,256], index: 1, kind: input, shape index: {}]   ;;  %s1493_s2 = inlined_call_operand.vmem [shape: f32[2,32,1], index: 2, kind: input, shape index: {}]   ;;  %s1494_s3 = inlined_call_operand.vmem [shape: f32[8,32], index: 3, kind: input, shape index: {}]   ;;  %s1495_s4 = inlined_call_operand.vmem [shape: f32[8,1], index: 4, kind: input, shape index: {}]   ;;  %s1496_s5 = inlined_call_operand.vmem [shape: f32[32,8], index: 5, kind: input, shape index: {}]   ;;  %s1497_s6 = inlined_call_operand.vmem [shape: f32[32,1], index: 6, kind: input, shape index: {}]   ;;  %s1498_s7 = inlined_call_operand.hbm [shape: f32[2,32,256], index: 7, kind: output, shape index: {}]  }
   0x1   :  { %14 = vsyncpa [#allocation3 + $0x1], 0 }
   0x2   :  { %15 = vsyncpa [#allocation4], 0 }
   0x3   :  { %17 = vsyncpa [#allocation4 + $0x1], 0  ;;  %s1172_s24 = smov 0   ;;  %s1174_s25 = smov 0  }
   0x4   :  { %s1176_s26 = smov 0   ;;  %s1178_s27 = smov 0  }
   0x5   :  { %s1180_s28 = smov 0   ;;  %s1182_s29 = smov 0  }
   0x6 LB: > { %s864_s30 = sadd.s32 4294967295, %s1122_s29   ;;  %s865_s8 = sadd.s32 4294967294, %s1122_s29   ;;  %s1122_s29 = sphi %s1182_s29, %s23_s29   ;;  %s1118_s28 = sphi %s1180_s28, %s1513_s28   ;;  %s1114_s27 = sphi %s1178_s27, %s1512_s27   ;;  %s1110_s26 = sphi %s1176_s26, %s1511_s26   ;;  %s1106_s25 = sphi %s1174_s25, %s1510_s25   ;;  %s1102_s24 = sphi %s1172_s24, %s1509_s24  }
   0x7   : > { %s35_s9 = sadd.s32 1, %s1118_s28  ;;  %s72_s10 = sadd.s32 1, %s1110_s26 }
   0x8   : > { %p37_p0 = scmp.ge.s32.totalorder %s35_s9, 2  ;;  %p79_p1 = scmp.ne.s32.totalorder %s1110_s26, %s1106_s25 }
   0x9   : > { %p80_p2 = scmp.eq.s32.totalorder %s1122_s29, 0  ;;  %p85_p3 = scmp.ne.s32.totalorder %s1106_s25, %s1102_s24 }
   0xa   : > { %s1515_s9 = smov (%p37_p0, %s35_s9), 0  ;;  %p86_p5 = scmp.eq.s32.totalorder %s864_s30, 0 }
   0xb   : > { %p1213_p4 = por %p80_p2, %p79_p1  ;;  %s67_s12 = ssub.s32 %s1118_s28, %s1515_s9 }
   0xc   : > { %p221_p6 = scmp.eq.s32.totalorder %s864_s30, 1  ;;  %p70_p7 = scmp.eq.s32.totalorder %s67_s12, 0 }
   0xd   : > { %p1219_p8 = por %p86_p5, %p85_p3  ;;  %p227_p10 = scmp.eq.s32.totalorder %s865_s8, 1 }
   0xe   : > { %p1223_p9 = por %p221_p6, %p79_p1  ;;  %p920_p13 = scmp.lt.s32.totalorder %s1122_s29, 2 }
   0xf   : > { %s1228_s15 = scalar_select %p70_p7, %s1110_s26, %s72_s10  }
  0x10   : > { %s1502_s14 = scalar_select %p1223_p9, 1, 0 }
  0x11   : > { %p1230_p11 = por %p227_p10, %p85_p3  ;;  %s272_s17 = sand.u32 1, %s1110_s26  }
  0x12   : > { %s868_s18 = sshll.u32 %s272_s17, 6  ;;  %s896_s19 = sshll.u32 %s1118_s28, 10 }
  0x13   : > { %s1503_s16 = scalar_select %p1230_p11, 1, 0 }
  0x14   : > { %s1241_s22 = scalar_lea.hbm %s1492_s1, %s896_s19  ;;  %s276_s23 = scalar_lea.vmem [#allocation2], %s868_s18 }
  0x15   : > { %s285_s30 = sshll.u32 %s276_s23, 4  ;;  %p1247_p0 = pnand %p920_p13, %p1213_p4  ;;  %s1243_s30 = int_to_ptr.vmem [resolvable:$true] %s285_s30 }
  0x16   : > { %s1252_s10 = scalar_lea.sflag [#allocation3], %s272_s17  ;;  %s1010_s12 = scalar_lea.hbm %s1241_s22, 1024 }
  0x17   : > { %p1011_p2 = scmp.ne.s32.totalorder %s1241_s22, %s1010_s12  ;;  %p1012_p3 = pneg %p1247_p0 }
  0x18   : > { %s1015_s11 = scalar_lea.hbm %s1492_s1, 2048  ;;  %p1016_p4 = scmp.lt.u32.totalorder %s1241_s22, %s1492_s1 }
  0x19   : > { %p1013_p5 = pnand %p1012_p3, %p1011_p2  ;;  %p1017_p7 = scmp.lt.u32.totalorder %s1015_s11, %s1010_s12 }
  0x1a   : > { %p1019_p13 = scmp.lt.u32.totalorder %s1010_s12, %s1241_s22 }
  0x1b   : > { %p1014_p6 = pneg %p1013_p5  ;;  %p1018_p10 = por %p1017_p7, %p1016_p4 }
  0x1d   : > { %p1020_p12 = por %p1019_p13, %p1018_p10 }
  0x1f   : > { %p1021_p1 = pnand %p1020_p12, %p1014_p6 }
  0x21   : > { %1024 = shalt.err (!%p1021_p1)
}
  0x22   : > { %s1025_s17 = scalar_lea.vmem %s1243_s30, 1024  ;;  %s1124_s23 = smov [#allocation2]  }
  0x23   : > { %p1026_p2 = scmp.ne.s32.totalorder %s1243_s30, %s1025_s17  ;;  %s1030_s18 = sshll.u32 %s1124_s23, 4  ;;  %s1031_s18 = int_to_ptr.vmem [resolvable:$false] %s1030_s18 }
  0x24   : > { %s1032_s19 = scalar_lea.vmem %s1031_s18, 2048  ;;  %p1033_p9 = scmp.lt.s32.totalorder %s1243_s30, %s1031_s18 }
  0x25   : > { %p1028_p5 = pnand %p1026_p2, %p1012_p3  ;;  %p1034_p4 = scmp.lt.s32.totalorder %s1032_s19, %s1025_s17 }
  0x27   : > { %p1029_p11 = pneg %p1028_p5  ;;  %p1035_p7 = por %p1034_p4, %p1033_p9 }
  0x29   : > { %p1036_p10 = pnand %p1035_p7, %p1029_p11 }
  0x2b   : > { %1039 = shalt.err (!%p1036_p10)
}
  0x2c   : > { %s1125_s12 = smov 256   ;;  %s1126_s11 = smov 16  }
  0x2d   : > { %915 = dma.hbm_to_vmem [thread:$0]  (!%p1247_p0), %s1241_s22, 1024, %s1243_s30, %s1252_s10, %s1125_s12, %s1125_s12, %s1126_s11  }
  0x2e   : > { %p301_p12 = scmp.lt.s32.totalorder %s1122_s29, 3  ;;  %p1505_p1 = scmp.ge.s32.totalorder %s1122_s29, 1 }
  0x30   : > { %p302_p3 = pnand %p1505_p1, %p301_p12 }
  0x31   : > { %s1284_s20 = sand.u32 (!%p302_p3), 1, %s1106_s25  }
  0x32   : > { %305 = sbr.rel (%p302_p3) target bundleno = 574 (0x23e), region = 48  ;;  %s872_s21 = sshll.u32 (!%p302_p3), %s1284_s20, 6 }
  0x33   : > { %s308_s17 = scalar_lea.sflag (!%p302_p3), [#allocation3], %s1284_s20  ;;  %s1290_s23 = scalar_lea.vmem (!%p302_p3), [#allocation2], %s872_s21 }
  0x39   : > { %1093 = dma.done.wait (%p1219_p8), %s308_s17, 1024  }
  0x3a   : > { %1095 = vsyncadd (%p1219_p8), %s308_s17, 4294966272  ;;  %p357_p9 = scmp.lt.s32.totalorder %s1114_s27, 1  ;;  %v1127_v0 = vmov 0.0   ;;  %v1128_v1 = vmov 0   ;;  %v1311_v4 = vld [vmem:[%s1290_s23 + $0x8] sm:$0xff]  ;;  %v1314_v5 = vld [vmem:[%s1290_s23 + $0x18] sm:$0xff] }
  0x3b   : > { %472 = vmatprep.mubr.f32.mxu0 %v1127_v0  ;;  %976 = vset.pattern.permute.xlu0 %v1128_v1  ;;  %v1325_v10 = vld [vmem:[%s1290_s23] sm:$0xff]  ;;  %v1328_v11 = vld [vmem:[%s1290_s23 + $0x10] sm:$0xff]  ;;  %v1339_v16 = vld [vmem:[%s1290_s23 + $0x28] sm:$0xff]  ;;  %vm404_vm0 = vcmask 261120   ;;  %vm509_vm1 = vcmask 64512   ;;  %s1415_s12 = scalar_lea.vmem [#allocation5], %s872_s21 }
  0x3c   : > { %s1299_s22 = scalar_select %p357_p9, %s1114_s27, 1  ;;  %586 = vmatprep.mubr.f32.mxu1 %v1127_v0  ;;  %977 = vset.pattern.permute.xlu1 %v1128_v1  ;;  %v1342_v17 = vld [vmem:[%s1290_s23 + $0x38] sm:$0xff]  ;;  %v1353_v23 = vld [vmem:[%s1290_s23 + $0x20] sm:$0xff]  ;;  %v1356_v25 = vld [vmem:[%s1290_s23 + $0x30] sm:$0xff] }
  0x3d   : > { %v398_v27 = vld [vmem:[%s1495_s4] sm:$0xff]  ;;  %v488_v33 = vld [vmem:[%s1497_s6 + $0x18] sm:$0xff]  ;;  %v486_v36 = vld [vmem:[%s1497_s6 + $0x8] sm:$0xff]  ;;  %s899_s21 = sshll.u32 %s1114_s27, 10  ;;  %s747_s11 = sshll.u32 %s1415_s12, 4  ;;  %s1441_s11 = int_to_ptr.vmem [resolvable:$true] %s747_s11 }
  0x3e   : > { %s897_s13 = sshll.u32 %s1299_s22, 6  ;;  %401 = vperm.xlu0 %976, %v398_v27   ;;  %v485_v30 = vld [vmem:[%s1497_s6] sm:$0xff]  ;;  %s898_s17 = sshll.u32 %s1299_s22, 5  ;;  %496 = vperm.xlu1 %977, %v486_v36   ;;  %v487_v37 = vld [vmem:[%s1497_s6 + $0x10] sm:$0xff]  ;;  %v482_v48 = vld [vmem:[%s1496_s5 + $0x8] sm:$0xff] }
  0x3f   : > { %s364_s10 = scalar_lea.vmem %s1491_s0, %s897_s13  ;;  %v397_v32 = vld [vmem:[%s1494_s3] sm:$0xff]  ;;  %s371_s19 = scalar_lea.vmem %s1493_s2, %s898_s17  ;;  %v483_v49 = vld [vmem:[%s1496_s5 + $0x10] sm:$0xff]  ;;  %v484_v50 = vld [vmem:[%s1496_s5 + $0x18] sm:$0xff] }
  0x40   : > { %v1306_v2 = vld [vmem:[%s364_s10 + $0x8] sm:$0xff]  ;;  %v1308_v3 = vld [vmem:[%s364_s10 + $0x18] sm:$0xff]  ;;  %v1318_v7 = vld [vmem:[%s364_s10] sm:$0xff]  ;;  %s1439_s13 = scalar_lea.hbm %s1498_s7, %s899_s21  ;;  %s732_s30 = scalar_lea.sflag [#allocation4], %s1284_s20 }
  0x41   : > { %v390_v6 = vadd.f32 %v1311_v4, %v1306_v2  ;;  %v1320_v8 = vld [vmem:[%s364_s10 + $0x10] sm:$0xff]  ;;  %v392_v9 = vadd.f32 %v1314_v5, %v1308_v3  ;;  %v1330_v12 = vld [vmem:[%s364_s10 + $0x28] sm:$0xff]  ;;  %v389_v13 = vadd.f32 %v1325_v10, %v1318_v7  ;;  %v1336_v15 = vld [vmem:[%s364_s10 + $0x38] sm:$0xff]  ;;  %s1040_s8 = scalar_lea.vmem %s1441_s11, 1024  ;;  %p1506_p11 = scmp.ne.s32.totalorder %s1502_s14, 0 }
  0x42   : > { %v391_v14 = vadd.f32 %v1328_v11, %v1320_v8  ;;  %v394_v19 = vadd.f32 %v1339_v16, %v1330_v12  ;;  %v396_v20 = vadd.f32 %v1342_v17, %v1336_v15  ;;  %v1348_v21 = vld [vmem:[%s364_s10 + $0x20] sm:$0xff]  ;;  %v1350_v22 = vld [vmem:[%s364_s10 + $0x30] sm:$0xff]  ;;  %491 = vperm.xlu0 %976, %v485_v30   ;;  %v612_v34 = vld [vmem:[%s371_s19 + $0x8] sm:$0xff]  ;;  %501 = vperm.xlu1 %977, %v487_v37   ;;  %p1041_p8 = scmp.ne.s32.totalorder %s1441_s11, %s1040_s8  ;;  %s1129_s27 = smov [#allocation5]  }
  0x43   : > { %v900_v18 = vpack.c.bf16 %v392_v9, %v390_v6  ;;  %v393_v26 = vadd.f32 %v1353_v23, %v1348_v21  ;;  %v395_v29 = vadd.f32 %v1356_v25, %v1350_v22  ;;  %v614_v35 = vld [vmem:[%s371_s19 + $0x18] sm:$0xff]  ;;  %v611_v38 = vld [vmem:[%s371_s19] sm:$0xff]  ;;  %v613_v39 = vld [vmem:[%s371_s19 + $0x10] sm:$0xff]  ;;  %s1044_s10 = sshll.u32 %s1129_s27, 4  ;;  %s1045_s10 = int_to_ptr.vmem [resolvable:$false] %s1044_s10 }
  0x44   : > { %v902_v24 = vpack.c.bf16 %v391_v14, %v389_v13  ;;  %v904_v28 = vpack.c.bf16 %v396_v20, %v394_v19  ;;  %v481_v47 = vld [vmem:[%s1496_s5] sm:$0xff]  ;;  %p1042_p0 = pnand %p1041_p8, %p1506_p11  ;;  %s1046_s18 = scalar_lea.vmem %s1045_s10, 2048 }
  0x45   : > { %901 = vmatprep.subr.bf16.mxu0 %v900_v18  ;;  %v906_v31 = vpack.c.bf16 %v395_v29, %v393_v26  ;;  %p1047_p13 = scmp.lt.s32.totalorder %s1441_s11, %s1045_s10  ;;  %p1048_p2 = scmp.lt.s32.totalorder %s1046_s18, %s1040_s8 }
  0x46   : > { %903 = vmatpush1.bf16.msra.mxu0 %v902_v24  ;;  %506 = vperm.xlu0 %976, %v488_v33   ;;  %p1043_p6 = pneg %p1042_p0 }
  0x47   : > { %905 = vmatprep.subr.bf16.mxu0 %v904_v28  ;;  %617 = vperm.xlu1 %977, %v611_v38   ;;  %p1049_p5 = por %p1048_p2, %p1047_p13 }
  0x49   : > { %p1050_p4 = pnand %p1049_p5, %p1043_p6 }
  0x4a   : > { %907 = vmatpush1.bf16.msra.mxu0 %v906_v31  ;;  %622 = vperm.xlu0 %976, %v612_v34  }
  0x4b   : > { %627 = vperm.xlu1 %977, %v613_v39  }
  0x4d   : > { %878 = vmatmul.mubr.msk.f32.vlgmr.msra.gmra.mrb[0].mxu0 %vm404_vm0, %v397_v32 }
  0x4e   : > { %632 = vperm.xlu0 %976, %v614_v35  }
  0xbd   : > { %v402_v40 = vpop.permute.xlu0 %401  ;;  %v497_v51 = vpop.permute.xlu1 %496 }
  0xc1   : > { %v492_v52 = vpop.permute.xlu0 %491  ;;  %v502_v53 = vpop.permute.xlu1 %501 }
  0xc5   : > { %v507_v54 = vpop.permute.xlu0 %506 }
  0xc6   : > { %v618_v58 = vpop.permute.xlu1 %617 }
  0xc9   : > { %v623_v6 = vpop.permute.xlu0 %622 }
  0xca   : > { %v628_v27 = vpop.permute.xlu1 %627 }
  0xcd   : > { %v633_v36 = vpop.permute.xlu0 %632 }
 0x120   : > { %v474_v41 = vpop.f32.mrb[0].mxu0 }
 0x121   : > { %v475_v42 = vadd.f32 %v474_v41, %v402_v40  ;;  %v476_v43 = vpop.f32.mrb[1].mxu0 }
 0x122   : > { %v477_v44 = vadd.f32 %v476_v43, %v402_v40 }
 0x123   : > { %v479_v46 = vmax.f32 %v475_v42, 0.0 }
 0x124   : > { %v480_v45 = vmax.f32 %v477_v44, 0.0 }
 0x126   : > { %522 = vmatprep.subr.mxu1 %v480_v45 }
 0x127   : > { %523 = vmatpush1.msra.mxu1 %v479_v46 }
 0x128   : > { %879 = vmatmul.mubr.msk.f32.vlgmr.msra.gmra.mrb[0].mxu1 %vm509_vm1, %v481_v47 }
 0x129   : > { %592 = vmatprep.mubr.f32.mxu1 %v1127_v0 }
 0x12c   : > { %880 = vmatmul.mubr.msk.f32.gmra.mrb[2].mxu1 %vm509_vm1, %v482_v48 }
 0x12d   : > { %598 = vmatprep.mubr.f32.mxu1 %v1127_v0 }
 0x130   : > { %881 = vmatmul.mubr.msk.f32.gmra.mrb[4].mxu1 %vm509_vm1, %v483_v49 }
 0x131   : > { %604 = vmatprep.mubr.f32.mxu1 %v1127_v0 }
 0x134   : > { %882 = vmatmul.mubr.msk.f32.gmra.mrb[6].mxu1 %vm509_vm1, %v484_v50 }
 0x1fb   : > { %v588_v55 = vpop.f32.mrb[0].mxu1 }
 0x1fc   : > { %v589_v56 = vadd.f32 %v588_v55, %v492_v52  ;;  %v590_v57 = vpop.f32.mrb[1].mxu1 }
 0x1fd   : > { %v591_v59 = vadd.f32 %v590_v57, %v492_v52 }
 0x1fe   : > { %v635_v60 = vadd.f32 %v618_v58, %v589_v56  ;;  %v692_v56 = vsub.f32 %v1306_v2, %v1311_v4 }
 0x1ff   : > { %v636_v61 = vadd.f32 %v618_v58, %v591_v59  ;;  %v594_v62 = vpop.f32.mrb[2].mxu1 }
 0x200   : > { %v883_v63 = vmul.f32 -1.442695, %v635_v60  ;;  %v595_v1 = vadd.f32 %v594_v62, %v497_v51  ;;  %v596_v0 = vpop.f32.mrb[3].mxu1 }
 0x201   : > { %v884_v9 = vmul.f32 -1.442695, %v636_v61  ;;  %v597_v13 = vadd.f32 %v596_v0, %v497_v51  ;;  %v693_v61 = vsub.f32 %v1320_v8, %v1328_v11 }
 0x202   : > { %978 = vpow2.f32 %v883_v63  ;;  %v637_v14 = vadd.f32 %v623_v6, %v595_v1  ;;  %v694_v1 = vsub.f32 %v1308_v3, %v1314_v5 }
 0x203   : > { %980 = vpow2.f32 %v884_v9  ;;  %v638_v18 = vadd.f32 %v623_v6, %v597_v13  ;;  %v600_v19 = vpop.f32.mrb[4].mxu1 }
 0x204   : > { %v885_v20 = vmul.f32 -1.442695, %v637_v14  ;;  %v601_v24 = vadd.f32 %v600_v19, %v502_v53  ;;  %v602_v26 = vpop.f32.mrb[5].mxu1  ;;  %v695_v14 = vsub.f32 %v1348_v21, %v1353_v23  ;;  %v696_v19 = vsub.f32 %v1330_v12, %v1339_v16 }
 0x205   : > { %v886_v28 = vmul.f32 -1.442695, %v638_v18  ;;  %v603_v29 = vadd.f32 %v602_v26, %v502_v53  ;;  %v697_v12 = vsub.f32 %v1350_v22, %v1356_v25 }
 0x206   : > { %982 = vpow2.f32 %v885_v20  ;;  %v639_v30 = vadd.f32 %v628_v27, %v601_v24 }
 0x207   : > { %984 = vpow2.f32 %v886_v28  ;;  %v640_v31 = vadd.f32 %v628_v27, %v603_v29  ;;  %v606_v32 = vpop.f32.mrb[6].mxu1 }
 0x208   : > { %v887_v33 = vmul.f32 -1.442695, %v639_v30  ;;  %v607_v34 = vadd.f32 %v606_v32, %v507_v54  ;;  %v608_v35 = vpop.f32.mrb[7].mxu1 }
 0x209   : > { %v888_v37 = vmul.f32 -1.442695, %v640_v31  ;;  %v609_v38 = vadd.f32 %v608_v35, %v507_v54  ;;  %v691_v54 = vsub.f32 %v1318_v7, %v1325_v10 }
 0x20a   : > { %986 = vpow2.f32 %v887_v33  ;;  %v641_v39 = vadd.f32 %v633_v36, %v607_v34 }
 0x20b   : > { %988 = vpow2.f32 %v888_v37  ;;  %v642_v40 = vadd.f32 %v633_v36, %v609_v38 }
 0x20c   : > { %v979_v41 = vpop.eup %978  ;;  %v889_v42 = vmul.f32 -1.442695, %v641_v39 }
 0x20d   : > { %v981_v43 = vpop.eup %980  ;;  %v667_v44 = vadd.f32 1.0, %v979_v41  ;;  %v890_v45 = vmul.f32 -1.442695, %v642_v40 }
 0x20e   : > { %v668_v46 = vadd.f32 1.0, %v981_v43  ;;  %990 = vpow2.f32 %v889_v42 }
 0x20f   : > { %992 = vrcp.f32 %v667_v44 }
 0x210   : > { %v983_v47 = vpop.eup %982  ;;  %994 = vrcp.f32 %v668_v46 }
 0x211   : > { %v985_v48 = vpop.eup %984  ;;  %v669_v49 = vadd.f32 1.0, %v983_v47  ;;  %996 = vpow2.f32 %v890_v45 }
 0x212   : > { %v670_v50 = vadd.f32 1.0, %v985_v48 }
 0x213   : > { %998 = vrcp.f32 %v669_v49 }
 0x214   : > { %v987_v51 = vpop.eup %986  ;;  %1000 = vrcp.f32 %v670_v50 }
 0x215   : > { %v989_v52 = vpop.eup %988  ;;  %v671_v53 = vadd.f32 1.0, %v987_v51 }
 0x216   : > { %v672_v55 = vadd.f32 1.0, %v989_v52 }
 0x217   : > { %1002 = vrcp.f32 %v671_v53 }
 0x218   : > { %v991_v57 = vpop.eup %990  ;;  %1004 = vrcp.f32 %v672_v55 }
 0x219   : > { %v993_v58 = vpop.eup %992  ;;  %v673_v59 = vadd.f32 1.0, %v991_v57 }
 0x21a   : > { %v995_v60 = vpop.eup %994  ;;  %v699_v62 = vmul.f32 %v993_v58, %v691_v54 }
 0x21b   : > { %v997_v63 = vpop.eup %996  ;;  %v700_v7 = vmul.f32 %v995_v60, %v692_v56  ;;  %1006 = vrcp.f32 %v673_v59 }
 0x21c   : > { %v707_v0 = vadd.f32 %v699_v62, %v1325_v10  ;;  %v674_v2 = vadd.f32 1.0, %v997_v63 }
 0x21d   : > { %v999_v6 = vpop.eup %998  ;;  %v708_v9 = vadd.f32 %v700_v7, %v1311_v4 }
 0x21e   : > { %v1001_v13 = vpop.eup %1000  ;;  %v715_v18 = vmul.f32 2.0, %v707_v0  ;;  %v701_v8 = vmul.f32 %v999_v6, %v693_v61  ;;  %1008 = vrcp.f32 %v674_v2 }
 0x21f   : > { %v716_v20 = vmul.f32 2.0, %v708_v9  ;;  %v702_v3 = vmul.f32 %v1001_v13, %v694_v1 }
 0x220   : > { %723 = vst [vmem:[%s1415_s12] sm:$0xff] %v715_v18  ;;  %v709_v4 = vadd.f32 %v701_v8, %v1328_v11 }
 0x221   : > { %v1003_v10 = vpop.eup %1002  ;;  %724 = vst [vmem:[%s1415_s12 + $0x8] sm:$0xff] %v716_v20  ;;  %v710_v21 = vadd.f32 %v702_v3, %v1314_v5  ;;  %v698_v5 = vsub.f32 %v1336_v15, %v1342_v17 }
 0x222   : > { %v1005_v24 = vpop.eup %1004  ;;  %v717_v26 = vmul.f32 2.0, %v709_v4  ;;  %v703_v27 = vmul.f32 %v1003_v10, %v695_v14 }
 0x223   : > { %v718_v28 = vmul.f32 2.0, %v710_v21  ;;  %v704_v29 = vmul.f32 %v1005_v24, %v696_v19 }
 0x224   : > { %725 = vst [vmem:[%s1415_s12 + $0x10] sm:$0xff] %v717_v26  ;;  %v711_v30 = vadd.f32 %v703_v27, %v1353_v23 }
 0x225   : > { %v1007_v11 = vpop.eup %1006  ;;  %726 = vst [vmem:[%s1415_s12 + $0x18] sm:$0xff] %v718_v28  ;;  %v712_v31 = vadd.f32 %v704_v29, %v1339_v16 }
 0x226   : > { %v719_v32 = vmul.f32 2.0, %v711_v30  ;;  %v705_v22 = vmul.f32 %v1007_v11, %v697_v12 }
 0x227   : > { %v720_v33 = vmul.f32 2.0, %v712_v31 }
 0x228   : > { %v1009_v34 = vpop.eup %1008  ;;  %727 = vst [vmem:[%s1415_s12 + $0x20] sm:$0xff] %v719_v32  ;;  %v713_v35 = vadd.f32 %v705_v22, %v1356_v25 }
 0x229   : > { %728 = vst [vmem:[%s1415_s12 + $0x28] sm:$0xff] %v720_v33  ;;  %v706_v23 = vmul.f32 %v1009_v34, %v698_v5 }
 0x22a   : > { %v721_v36 = vmul.f32 2.0, %v713_v35 }
 0x22b   : > { %v714_v15 = vadd.f32 %v706_v23, %v1342_v17 }
 0x22c   : > { %729 = vst [vmem:[%s1415_s12 + $0x30] sm:$0xff] %v721_v36 }
 0x22d   : > { %v722_v16 = vmul.f32 2.0, %v714_v15 }
 0x22f   : > { %730 = vst [vmem:[%s1415_s12 + $0x38] sm:$0xff] %v722_v16 }
 0x230   : > { %1053 = shalt.err (!%p1050_p4)
}
 0x231   : > { %s1054_s19 = scalar_lea.hbm %s1439_s13, 1024  ;;  %s1058_s21 = scalar_lea.hbm %s1498_s7, 2048 }
 0x232   : > { %p1055_p7 = scmp.ne.s32.totalorder %s1439_s13, %s1054_s19  ;;  %p1059_p1 = scmp.lt.u32.totalorder %s1439_s13, %s1498_s7 }
 0x233   : > { %p1060_p3 = scmp.lt.u32.totalorder %s1058_s21, %s1054_s19  ;;  %p1062_p8 = scmp.lt.u32.totalorder %s1054_s19, %s1439_s13 }
 0x234   : > { %p1056_p10 = pnand %p1055_p7, %p1506_p11 }
 0x235   : > { %p1061_p9 = por %p1060_p3, %p1059_p1 }
 0x236   : > { %p1057_p12 = pneg %p1056_p10 }
 0x237   : > { %p1063_p0 = por %p1062_p8, %p1061_p9 }
 0x239   : > { %p1064_p6 = pnand %p1063_p0, %p1057_p12 }
 0x23b   : > { %1067 = shalt.err (!%p1064_p6)
}
 0x23c   : > { %s1130_s8 = smov 256   ;;  %s1131_s27 = smov 16  }
 0x23d   : > { %910 = dma.vmem_to_hbm [thread:$0]  (%p1506_p11), %s1441_s11, 1024, %s1439_s13, %s732_s30, %s1130_s8, %s1130_s8, %s1131_s27  }
 0x23e PF: > { %s762_s10 = sand.u32 1, %s1102_s24   ;;  %p1507_p13 = scmp.ne.s32.totalorder %s1503_s16, 0 }
 0x23f   : > { %p1508_p2 = scmp.ge.s32.totalorder %s1122_s29, 2  ;;  %s763_s18 = scalar_lea.sflag [#allocation4], %s762_s10 }
 0x241   : > { %p917_p5 = pnand %p1508_p2, %p1507_p13 }
 0x243   : > { %1097 = dma.done.wait (!%p917_p5), %s763_s18, 1024  }
 0x244   : > { %1099 = vsyncadd (!%p917_p5), %s763_s18, 4294966272  ;;  %s23_s29 = sadd.s32 1, %s1122_s29   ;;  %s1509_s24 = smov %s1106_s25 }
 0x245   : > { %p20_p4 = scmp.ge.s32.totalorder %s23_s29, 4   ;;  %s1510_s25 = smov %s1110_s26 }
 0x246   : > { %s1511_s26 = smov %s1228_s15  ;;  %s1512_s27 = smov %s1118_s28 }
 0x247   : > { %s1513_s28 = smov %s1515_s9  ;;  %22 = sbr.rel (!%p20_p4) target bundleno = 6 (0x6), region = 99 }
 0x24e   :  { %768 = vsyncpa [#allocation3], 1 }
 0x24f   :  { %770 = vsyncpa [#allocation3 + $0x1], 1 }
 0x250   :  { %771 = vsyncpa [#allocation4], 1 }
 0x251   :  { %773 = vsyncpa [#allocation4 + $0x1], 1 }

</bundles_post_ra>
